<compile_context>
chip_gen: v6e
topology: v6e:2x2x1
jax: 0.10.0
libtpu: 0.0.40
codegen_flags: <defaults>
</compile_context>

<pallas_src>
import functools

import jax
import jax.numpy as jnp
from jax import lax
from jax.experimental import pallas as pl
from jax.experimental.pallas import tpu as pltpu

_LANE = 128

# RGB -> XYZ (kornia coefficients) with the D65 white-point normalisation
# (x /= 0.95047, z /= 1.08883) folded into the matrix to save VALU ops.
_M_X = (0.412453 / 0.95047, 0.357580 / 0.95047, 0.180423 / 0.95047)
_M_Y = (0.212671, 0.715160, 0.072169)
_M_Z = (0.019334 / 1.08883, 0.119193 / 1.08883, 0.950227 / 1.08883)


# ----------------------------- LAB conversion math -----------------------------
def _rgb_to_fxyz(r, g, b):
    """(R,128) float32 RGB planes -> f(X/Xn), f(Y), f(Z/Zn)  (kornia rgb_to_lab)."""

    def srgb_linearize(c):
        # Unselected pow branch may be NaN for c < -0.055; jnp.where discards it.
        return jnp.where(c > 0.04045,
                         jnp.power((c + 0.055) / 1.055, 2.4),
                         c / 12.92)

    r = srgb_linearize(r)
    g = srgb_linearize(g)
    b = srgb_linearize(b)

    x = _M_X[0] * r + _M_X[1] * g + _M_X[2] * b
    y = _M_Y[0] * r + _M_Y[1] * g + _M_Y[2] * b
    z = _M_Z[0] * r + _M_Z[1] * g + _M_Z[2] * b

    def f(t):
        # pow stays on the EUP (it has slack); VALU is the marginally binding slot.
        return jnp.where(t > 0.008856,
                         jnp.power(t, 1.0 / 3.0),
                         7.787 * t + 4.0 / 29.0)

    return f(x), f(y), f(z)


# --------------------------------- Pallas kernel --------------------------------
def _color_loss_kernel(x_ref, y_ref, out_ref, *, blocks_per_split, rows_valid,
                       need_mask):
    # x_ref / y_ref: (1, 3, R, 128) RGB blocks (native dtype) of one image.
    # out_ref:       (1, 1, 1, 128) float32 partial-sum accumulator for this
    #                (image, row-split), resident across the reduction grid axis.
    p = pl.program_id(1)   # row split        (parallel)
    r = pl.program_id(2)   # row block in split (arbitrary / reduction)

    @pl.when(r == 0)
    def _():
        out_ref[...] = jnp.zeros_like(out_ref)

    def planes(ref):
        return (ref[0, 0].astype(jnp.float32),
                ref[0, 1].astype(jnp.float32),
                ref[0, 2].astype(jnp.float32))

    fx1, fy1, fz1 = _rgb_to_fxyz(*planes(x_ref))
    fx2, fy2, fz2 = _rgb_to_fxyz(*planes(y_ref))

    dfx = fx1 - fx2
    dfy = fy1 - fy2
    dfz = fz1 - fz2
    # |LAB1 - LAB2|^2 without materializing L/a/b:
    #   L = 116 fy - 16,  a = 500 (fx - fy),  b = 200 (fy - fz)
    dsq = ((116.0 * 116.0) * dfy * dfy
           + (500.0 * 500.0) * (dfx - dfy) * (dfx - dfy)
           + (200.0 * 200.0) * (dfy - dfz) * (dfy - dfz))            # (R, 128)

    if need_mask:
        # Tail rows of the last block are OOB garbage (possibly NaN/Inf): discard
        # with a select (NOT a multiply, NaN*0 = NaN).
        block_rows = dsq.shape[0]
        row = lax.broadcasted_iota(jnp.int32, dsq.shape, 0)
        global_row = (p * blocks_per_split + r) * block_rows + row
        dsq = jnp.where(global_row < rows_valid, dsq, 0.0)

    out_ref[...] += jnp.sum(dsq, axis=0, keepdims=True)[None, None]  # (1,1,1,128)


# ----------------------------------- Wrapper -------------------------------------
def _cdiv(a, b):
    return -(-a // b)


def _round_up(a, m):
    return _cdiv(a, m) * m


@functools.partial(jax.jit, static_argnames=("rows_per_block",))
def color_consistency_loss(inputs, reconstructions, rows_per_block=1024):
    """MSE(rgb_to_lab(inputs), rgb_to_lab(reconstructions)); NCHW RGB inputs.

    rows_per_block: 128-pixel rows per grid block.  1024 (f32: 6 MiB of
    double-buffered input blocks) is safe on every generation's scoped VMEM;
    2048 is a slightly better fit on v6e.
    """
    B, C, H, W = inputs.shape
    assert C == 3, "expected RGB images (C == 3)"
    HW = H * W

    # Native dtype straight into the kernel (no wrapper astype pass); bf16 inputs
    # automatically halve HBM traffic.
    x = inputs.reshape(B, 3, HW)
    y = reconstructions.reshape(B, 3, HW)
    hw_pad = _round_up(HW, _LANE)
    if hw_pad != HW:
        # TODO(synk): the <128-pixel lane tail still costs a jnp.pad copy; folding
        # it into the in-kernel mask would require tiling the 1-D (B,3,HW) view.
        x = jnp.pad(x, ((0, 0), (0, 0), (0, hw_pad - HW)))
        y = jnp.pad(y, ((0, 0), (0, 0), (0, hw_pad - HW)))
    rows = hw_pad // _LANE
    x = x.reshape(B, 3, rows, _LANE)   # free reshape (contiguous trailing dims)
    y = y.reshape(B, 3, rows, _LANE)

    # Row-block size (multiple of 16 for bf16 sublane packing) and grid layout.
    max_rows = max(16, (rows_per_block // 16) * 16)
    if rows <= max_rows:
        splits, blocks_per_split, block_rows = 1, 1, rows          # full-dim block
    else:
        splits = 2                                                 # feed both v7x TCs
        blocks_per_split = _cdiv(rows, 2 * max_rows)
        block_rows = _round_up(_cdiv(rows, splits * blocks_per_split), 16)
    num_blocks = splits * blocks_per_split
    need_mask = num_blocks * block_rows != rows
    max_block = _cdiv(rows, block_rows) - 1        # last block containing real data

    def in_index(b, p, r):
        # Clamp so a (rare) fully-out-of-range trailing block re-reads the last
        # valid block; its contribution is masked to zero inside the kernel.
        return (b, 0, jnp.minimum(p * blocks_per_split + r, max_block), 0)

    kernel = functools.partial(
        _color_loss_kernel,
        blocks_per_split=blocks_per_split,
        rows_valid=rows,
        need_mask=need_mask,
    )

    n_px = B * hw_pad
    cost = pl.CostEstimate(
        flops=115 * n_px,            # ~115 VALU ops per pixel pair
        transcendentals=24 * n_px,   # 12 pow per pixel pair, ~2 EUP pushes each
        bytes_accessed=(x.size * x.dtype.itemsize + y.size * y.dtype.itemsize
                        + B * splits * _LANE * 4),
    )

    partials = pl.pallas_call(
        kernel,
        out_shape=jax.ShapeDtypeStruct((B, splits, 1, _LANE), jnp.float32),
        grid_spec=pltpu.PrefetchScalarGridSpec(
            num_scalar_prefetch=0,
            grid=(B, splits, blocks_per_split),
            in_specs=[
                pl.BlockSpec((1, 3, block_rows, _LANE), in_index),
                pl.BlockSpec((1, 3, block_rows, _LANE), in_index),
            ],
            out_specs=pl.BlockSpec((1, 1, 1, _LANE), lambda b, p, r: (b, p, 0, 0)),
        ),
        compiler_params=pltpu.CompilerParams(
            # Batch & row-split axes shard across TensorCores (v7x megacore);
            # the row-block axis is the carried reduction -> "arbitrary" and last.
            dimension_semantics=("parallel", "parallel", "arbitrary"),
            vmem_limit_bytes=32 * 1024 * 1024,
        ),
        cost_estimate=cost,
    )(x, y)

    # MSE mean over the true B*3*H*W LAB elements (pad/masked regions contribute 0).
    return jnp.sum(partials) / jnp.float32(3 * B * H * W)


# ------------------------------- Pure-JAX reference ------------------------------
def _rgb_to_lab_ref(img):
    r, g, b = img[:, 0], img[:, 1], img[:, 2]

    def lin(c):
        return jnp.where(c > 0.04045, jnp.power((c + 0.055) / 1.055, 2.4), c / 12.92)

    r, g, b = lin(r), lin(g), lin(b)
    x = 0.412453 * r + 0.357580 * g + 0.180423 * b
    y = 0.212671 * r + 0.715160 * g + 0.072169 * b
    z = 0.019334 * r + 0.119193 * g + 0.950227 * b
    x = x / 0.95047
    z = z / 1.08883

    def f(t):
        return jnp.where(t > 0.008856, jnp.power(t, 1.0 / 3.0), 7.787 * t + 4.0 / 29.0)

    fx, fy, fz = f(x), f(y), f(z)
    return jnp.stack([116.0 * fy - 16.0, 500.0 * (fx - fy), 200.0 * (fy - fz)], axis=1)


def _loss_ref(inputs, recons):
    a = _rgb_to_lab_ref(inputs)
    b = _rgb_to_lab_ref(recons)
    return jnp.mean((a - b) ** 2)


if __name__ == "__main__":
    key = jax.random.PRNGKey(0)
    k1, k2, k3, k4 = jax.random.split(key, 4)

    # Primary small case: batch=2, RGB, 16x16 (single block per image).
    inputs = jax.random.uniform(k1, (2, 3, 16, 16), dtype=jnp.float32)
    recons = jax.random.uniform(k2, (2, 3, 16, 16), dtype=jnp.float32)
    loss = jax.block_until_ready(color_consistency_loss(inputs, recons))
    ref = jax.block_until_ready(_loss_ref(inputs, recons))
    assert jnp.allclose(loss, ref, rtol=5e-4, atol=5e-4), (loss, ref)

    # Second case exercising the chunked grid, the row split, the in-kernel tail
    # mask and the <128-px lane-pad path (HW=2500 -> rows=20 > rows_per_block=16).
    inputs2 = jax.random.uniform(k3, (2, 3, 50, 50), dtype=jnp.float32)
    recons2 = jax.random.uniform(k4, (2, 3, 50, 50), dtype=jnp.float32)
    loss2 = jax.block_until_ready(
        color_consistency_loss(inputs2, recons2, rows_per_block=16))
    ref2 = jax.block_until_ready(_loss_ref(inputs2, recons2))
    assert jnp.allclose(loss2, ref2, rtol=5e-4, atol=5e-4), (loss2, ref2)

    print("KERNEL_OK")
</pallas_src>

<mosaic_0001>
module attributes {stable_mosaic.version = 11 : i64} {
  func.func @_color_loss_kernel(%arg0: i32, %arg1: i32, %arg2: i32, %arg3: memref<1x3x2x128xf32, #tpu.memory_space<vmem>>, %arg4: memref<1x3x2x128xf32, #tpu.memory_space<vmem>>, %arg5: memref<1x1x1x128xf32, #tpu.memory_space<vmem>>) attributes {dimension_semantics = [#tpu.dimension_semantics<parallel>, #tpu.dimension_semantics<parallel>, #tpu.dimension_semantics<arbitrary>], iteration_bounds = array<i64: 2, 1, 1>, scalar_prefetch = 0 : i64, scratch_operands = 0 : i64, tpu.core_type = #tpu.core_type<tc>, window_params = [{transform_indices = @transform_0, window_bounds = array<i64: 1, 3, 2, 128>}, {transform_indices = @transform_1, window_bounds = array<i64: 1, 3, 2, 128>}, {transform_indices = @transform_2, window_bounds = array<i64: 1, 1, 1, 128>}]} {
    %c0_i32 = arith.constant 0 : i32
    %0 = arith.cmpi eq, %arg2, %c0_i32 : i32
    %1 = arith.extui %0 : i1 to i32
    %c0_i32_0 = arith.constant 0 : i32
    %2 = arith.cmpi ne, %1, %c0_i32_0 : i32
    scf.if %2 {
      %cst_105 = arith.constant 0.000000e+00 : f32
      %207 = vector.broadcast %cst_105 : f32 to vector<1x1x1x128xf32>
      %c0_106 = arith.constant 0 : index
      %c0_107 = arith.constant 0 : index
      %c0_108 = arith.constant 0 : index
      %c0_109 = arith.constant 0 : index
      %208 = vector.load %arg5[%c0_106, %c0_107, %c0_108, %c0_109] : memref<1x1x1x128xf32, #tpu.memory_space<vmem>>, vector<1x1x1x128xf32>
      tpu.vector_store %arg5[%c0_106, %c0_107, %c0_108, %c0_109], %207 {strides = array<i32>} : memref<1x1x1x128xf32, #tpu.memory_space<vmem>>, vector<1x1x1x128xf32>,
    } else {
    }
    %c0 = arith.constant 0 : index
    %c0_1 = arith.constant 0 : index
    %c0_2 = arith.constant 0 : index
    %c0_3 = arith.constant 0 : index
    %3 = vector.load %arg3[%c0, %c0_1, %c0_2, %c0_3] : memref<1x3x2x128xf32, #tpu.memory_space<vmem>>, vector<1x1x2x128xf32>
    %4 = vector.shape_cast %3 : vector<1x1x2x128xf32> to vector<2x128xf32>
    %c0_4 = arith.constant 0 : index
    %c1 = arith.constant 1 : index
    %c0_5 = arith.constant 0 : index
    %c0_6 = arith.constant 0 : index
    %5 = vector.load %arg3[%c0_4, %c1, %c0_5, %c0_6] : memref<1x3x2x128xf32, #tpu.memory_space<vmem>>, vector<1x1x2x128xf32>
    %6 = vector.shape_cast %5 : vector<1x1x2x128xf32> to vector<2x128xf32>
    %c0_7 = arith.constant 0 : index
    %c2 = arith.constant 2 : index
    %c0_8 = arith.constant 0 : index
    %c0_9 = arith.constant 0 : index
    %7 = vector.load %arg3[%c0_7, %c2, %c0_8, %c0_9] : memref<1x3x2x128xf32, #tpu.memory_space<vmem>>, vector<1x1x2x128xf32>
    %8 = vector.shape_cast %7 : vector<1x1x2x128xf32> to vector<2x128xf32>
    %cst = arith.constant 4.045000e-02 : f32
    %9 = vector.broadcast %cst : f32 to vector<2x128xf32>
    %10 = arith.cmpf ogt, %4, %9 : vector<2x128xf32>
    %cst_10 = arith.constant 5.500000e-02 : f32
    %11 = vector.broadcast %cst_10 : f32 to vector<2x128xf32>
    %12 = arith.addf %4, %11 : vector<2x128xf32>
    %cst_11 = arith.constant 1.055000e+00 : f32
    %13 = vector.broadcast %cst_11 : f32 to vector<2x128xf32>
    %14 = arith.divf %12, %13 : vector<2x128xf32>
    %cst_12 = arith.constant 2.400000e+00 : f32
    %15 = vector.broadcast %cst_12 : f32 to vector<2x128xf32>
    %16 = math.powf %14, %15 : vector<2x128xf32>
    %cst_13 = arith.constant 1.292000e+01 : f32
    %17 = vector.broadcast %cst_13 : f32 to vector<2x128xf32>
    %18 = arith.divf %4, %17 : vector<2x128xf32>
    %19 = arith.select %10, %16, %18 : vector<2x128xi1>, vector<2x128xf32>
    %cst_14 = arith.constant 4.045000e-02 : f32
    %20 = vector.broadcast %cst_14 : f32 to vector<2x128xf32>
    %21 = arith.cmpf ogt, %6, %20 : vector<2x128xf32>
    %cst_15 = arith.constant 5.500000e-02 : f32
    %22 = vector.broadcast %cst_15 : f32 to vector<2x128xf32>
    %23 = arith.addf %6, %22 : vector<2x128xf32>
    %cst_16 = arith.constant 1.055000e+00 : f32
    %24 = vector.broadcast %cst_16 : f32 to vector<2x128xf32>
    %25 = arith.divf %23, %24 : vector<2x128xf32>
    %cst_17 = arith.constant 2.400000e+00 : f32
    %26 = vector.broadcast %cst_17 : f32 to vector<2x128xf32>
    %27 = math.powf %25, %26 : vector<2x128xf32>
    %cst_18 = arith.constant 1.292000e+01 : f32
    %28 = vector.broadcast %cst_18 : f32 to vector<2x128xf32>
    %29 = arith.divf %6, %28 : vector<2x128xf32>
    %30 = arith.select %21, %27, %29 : vector<2x128xi1>, vector<2x128xf32>
    %cst_19 = arith.constant 4.045000e-02 : f32
    %31 = vector.broadcast %cst_19 : f32 to vector<2x128xf32>
    %32 = arith.cmpf ogt, %8, %31 : vector<2x128xf32>
    %cst_20 = arith.constant 5.500000e-02 : f32
    %33 = vector.broadcast %cst_20 : f32 to vector<2x128xf32>
    %34 = arith.addf %8, %33 : vector<2x128xf32>
    %cst_21 = arith.constant 1.055000e+00 : f32
    %35 = vector.broadcast %cst_21 : f32 to vector<2x128xf32>
    %36 = arith.divf %34, %35 : vector<2x128xf32>
    %cst_22 = arith.constant 2.400000e+00 : f32
    %37 = vector.broadcast %cst_22 : f32 to vector<2x128xf32>
    %38 = math.powf %36, %37 : vector<2x128xf32>
    %cst_23 = arith.constant 1.292000e+01 : f32
    %39 = vector.broadcast %cst_23 : f32 to vector<2x128xf32>
    %40 = arith.divf %8, %39 : vector<2x128xf32>
    %41 = arith.select %32, %38, %40 : vector<2x128xi1>, vector<2x128xf32>
    %cst_24 = arith.constant 0.433946371 : f32
    %42 = vector.broadcast %cst_24 : f32 to vector<2x128xf32>
    %43 = arith.mulf %42, %19 : vector<2x128xf32>
    %cst_25 = arith.constant 0.376213878 : f32
    %44 = vector.broadcast %cst_25 : f32 to vector<2x128xf32>
    %45 = arith.mulf %44, %30 : vector<2x128xf32>
    %46 = arith.addf %43, %45 : vector<2x128xf32>
    %cst_26 = arith.constant 0.189825028 : f32
    %47 = vector.broadcast %cst_26 : f32 to vector<2x128xf32>
    %48 = arith.mulf %47, %41 : vector<2x128xf32>
    %49 = arith.addf %46, %48 : vector<2x128xf32>
    %cst_27 = arith.constant 2.126710e-01 : f32
    %50 = vector.broadcast %cst_27 : f32 to vector<2x128xf32>
    %51 = arith.mulf %50, %19 : vector<2x128xf32>
    %cst_28 = arith.constant 7.151600e-01 : f32
    %52 = vector.broadcast %cst_28 : f32 to vector<2x128xf32>
    %53 = arith.mulf %52, %30 : vector<2x128xf32>
    %54 = arith.addf %51, %53 : vector<2x128xf32>
    %cst_29 = arith.constant 7.216900e-02 : f32
    %55 = vector.broadcast %cst_29 : f32 to vector<2x128xf32>
    %56 = arith.mulf %55, %41 : vector<2x128xf32>
    %57 = arith.addf %54, %56 : vector<2x128xf32>
    %cst_30 = arith.constant 0.0177566744 : f32
    %58 = vector.broadcast %cst_30 : f32 to vector<2x128xf32>
    %59 = arith.mulf %58, %19 : vector<2x128xf32>
    %cst_31 = arith.constant 0.109468877 : f32
    %60 = vector.broadcast %cst_31 : f32 to vector<2x128xf32>
    %61 = arith.mulf %60, %30 : vector<2x128xf32>
    %62 = arith.addf %59, %61 : vector<2x128xf32>
    %cst_32 = arith.constant 0.872704625 : f32
    %63 = vector.broadcast %cst_32 : f32 to vector<2x128xf32>
    %64 = arith.mulf %63, %41 : vector<2x128xf32>
    %65 = arith.addf %62, %64 : vector<2x128xf32>
    %cst_33 = arith.constant 8.856000e-03 : f32
    %66 = vector.broadcast %cst_33 : f32 to vector<2x128xf32>
    %67 = arith.cmpf ogt, %49, %66 : vector<2x128xf32>
    %cst_34 = arith.constant 0.333333343 : f32
    %68 = vector.broadcast %cst_34 : f32 to vector<2x128xf32>
    %69 = math.powf %49, %68 : vector<2x128xf32>
    %cst_35 = arith.constant 7.787000e+00 : f32
    %70 = vector.broadcast %cst_35 : f32 to vector<2x128xf32>
    %71 = arith.mulf %70, %49 : vector<2x128xf32>
    %cst_36 = arith.constant 0.137931034 : f32
    %72 = vector.broadcast %cst_36 : f32 to vector<2x128xf32>
    %73 = arith.addf %71, %72 : vector<2x128xf32>
    %74 = arith.select %67, %69, %73 : vector<2x128xi1>, vector<2x128xf32>
    %cst_37 = arith.constant 8.856000e-03 : f32
    %75 = vector.broadcast %cst_37 : f32 to vector<2x128xf32>
    %76 = arith.cmpf ogt, %57, %75 : vector<2x128xf32>
    %cst_38 = arith.constant 0.333333343 : f32
    %77 = vector.broadcast %cst_38 : f32 to vector<2x128xf32>
    %78 = math.powf %57, %77 : vector<2x128xf32>
    %cst_39 = arith.constant 7.787000e+00 : f32
    %79 = vector.broadcast %cst_39 : f32 to vector<2x128xf32>
    %80 = arith.mulf %79, %57 : vector<2x128xf32>
    %cst_40 = arith.constant 0.137931034 : f32
    %81 = vector.broadcast %cst_40 : f32 to vector<2x128xf32>
    %82 = arith.addf %80, %81 : vector<2x128xf32>
    %83 = arith.select %76, %78, %82 : vector<2x128xi1>, vector<2x128xf32>
    %cst_41 = arith.constant 8.856000e-03 : f32
    %84 = vector.broadcast %cst_41 : f32 to vector<2x128xf32>
    %85 = arith.cmpf ogt, %65, %84 : vector<2x128xf32>
    %cst_42 = arith.constant 0.333333343 : f32
    %86 = vector.broadcast %cst_42 : f32 to vector<2x128xf32>
    %87 = math.powf %65, %86 : vector<2x128xf32>
    %cst_43 = arith.constant 7.787000e+00 : f32
    %88 = vector.broadcast %cst_43 : f32 to vector<2x128xf32>
    %89 = arith.mulf %88, %65 : vector<2x128xf32>
    %cst_44 = arith.constant 0.137931034 : f32
    %90 = vector.broadcast %cst_44 : f32 to vector<2x128xf32>
    %91 = arith.addf %89, %90 : vector<2x128xf32>
    %92 = arith.select %85, %87, %91 : vector<2x128xi1>, vector<2x128xf32>
    %c0_45 = arith.constant 0 : index
    %c0_46 = arith.constant 0 : index
    %c0_47 = arith.constant 0 : index
    %c0_48 = arith.constant 0 : index
    %93 = vector.load %arg4[%c0_45, %c0_46, %c0_47, %c0_48] : memref<1x3x2x128xf32, #tpu.memory_space<vmem>>, vector<1x1x2x128xf32>
    %94 = vector.shape_cast %93 : vector<1x1x2x128xf32> to vector<2x128xf32>
    %c0_49 = arith.constant 0 : index
    %c1_50 = arith.constant 1 : index
    %c0_51 = arith.constant 0 : index
    %c0_52 = arith.constant 0 : index
    %95 = vector.load %arg4[%c0_49, %c1_50, %c0_51, %c0_52] : memref<1x3x2x128xf32, #tpu.memory_space<vmem>>, vector<1x1x2x128xf32>
    %96 = vector.shape_cast %95 : vector<1x1x2x128xf32> to vector<2x128xf32>
    %c0_53 = arith.constant 0 : index
    %c2_54 = arith.constant 2 : index
    %c0_55 = arith.constant 0 : index
    %c0_56 = arith.constant 0 : index
    %97 = vector.load %arg4[%c0_53, %c2_54, %c0_55, %c0_56] : memref<1x3x2x128xf32, #tpu.memory_space<vmem>>, vector<1x1x2x128xf32>
    %98 = vector.shape_cast %97 : vector<1x1x2x128xf32> to vector<2x128xf32>
    %cst_57 = arith.constant 4.045000e-02 : f32
    %99 = vector.broadcast %cst_57 : f32 to vector<2x128xf32>
    %100 = arith.cmpf ogt, %94, %99 : vector<2x128xf32>
    %cst_58 = arith.constant 5.500000e-02 : f32
    %101 = vector.broadcast %cst_58 : f32 to vector<2x128xf32>
    %102 = arith.addf %94, %101 : vector<2x128xf32>
    %cst_59 = arith.constant 1.055000e+00 : f32
    %103 = vector.broadcast %cst_59 : f32 to vector<2x128xf32>
    %104 = arith.divf %102, %103 : vector<2x128xf32>
    %cst_60 = arith.constant 2.400000e+00 : f32
    %105 = vector.broadcast %cst_60 : f32 to vector<2x128xf32>
    %106 = math.powf %104, %105 : vector<2x128xf32>
    %cst_61 = arith.constant 1.292000e+01 : f32
    %107 = vector.broadcast %cst_61 : f32 to vector<2x128xf32>
    %108 = arith.divf %94, %107 : vector<2x128xf32>
    %109 = arith.select %100, %106, %108 : vector<2x128xi1>, vector<2x128xf32>
    %cst_62 = arith.constant 4.045000e-02 : f32
    %110 = vector.broadcast %cst_62 : f32 to vector<2x128xf32>
    %111 = arith.cmpf ogt, %96, %110 : vector<2x128xf32>
    %cst_63 = arith.constant 5.500000e-02 : f32
    %112 = vector.broadcast %cst_63 : f32 to vector<2x128xf32>
    %113 = arith.addf %96, %112 : vector<2x128xf32>
    %cst_64 = arith.constant 1.055000e+00 : f32
    %114 = vector.broadcast %cst_64 : f32 to vector<2x128xf32>
    %115 = arith.divf %113, %114 : vector<2x128xf32>
    %cst_65 = arith.constant 2.400000e+00 : f32
    %116 = vector.broadcast %cst_65 : f32 to vector<2x128xf32>
    %117 = math.powf %115, %116 : vector<2x128xf32>
    %cst_66 = arith.constant 1.292000e+01 : f32
    %118 = vector.broadcast %cst_66 : f32 to vector<2x128xf32>
    %119 = arith.divf %96, %118 : vector<2x128xf32>
    %120 = arith.select %111, %117, %119 : vector<2x128xi1>, vector<2x128xf32>
    %cst_67 = arith.constant 4.045000e-02 : f32
    %121 = vector.broadcast %cst_67 : f32 to vector<2x128xf32>
    %122 = arith.cmpf ogt, %98, %121 : vector<2x128xf32>
    %cst_68 = arith.constant 5.500000e-02 : f32
    %123 = vector.broadcast %cst_68 : f32 to vector<2x128xf32>
    %124 = arith.addf %98, %123 : vector<2x128xf32>
    %cst_69 = arith.constant 1.055000e+00 : f32
    %125 = vector.broadcast %cst_69 : f32 to vector<2x128xf32>
    %126 = arith.divf %124, %125 : vector<2x128xf32>
    %cst_70 = arith.constant 2.400000e+00 : f32
    %127 = vector.broadcast %cst_70 : f32 to vector<2x128xf32>
    %128 = math.powf %126, %127 : vector<2x128xf32>
    %cst_71 = arith.constant 1.292000e+01 : f32
    %129 = vector.broadcast %cst_71 : f32 to vector<2x128xf32>
    %130 = arith.divf %98, %129 : vector<2x128xf32>
    %131 = arith.select %122, %128, %130 : vector<2x128xi1>, vector<2x128xf32>
    %cst_72 = arith.constant 0.433946371 : f32
    %132 = vector.broadcast %cst_72 : f32 to vector<2x128xf32>
    %133 = arith.mulf %132, %109 : vector<2x128xf32>
    %cst_73 = arith.constant 0.376213878 : f32
    %134 = vector.broadcast %cst_73 : f32 to vector<2x128xf32>
    %135 = arith.mulf %134, %120 : vector<2x128xf32>
    %136 = arith.addf %133, %135 : vector<2x128xf32>
    %cst_74 = arith.constant 0.189825028 : f32
    %137 = vector.broadcast %cst_74 : f32 to vector<2x128xf32>
    %138 = arith.mulf %137, %131 : vector<2x128xf32>
    %139 = arith.addf %136, %138 : vector<2x128xf32>
    %cst_75 = arith.constant 2.126710e-01 : f32
    %140 = vector.broadcast %cst_75 : f32 to vector<2x128xf32>
    %141 = arith.mulf %140, %109 : vector<2x128xf32>
    %cst_76 = arith.constant 7.151600e-01 : f32
    %142 = vector.broadcast %cst_76 : f32 to vector<2x128xf32>
    %143 = arith.mulf %142, %120 : vector<2x128xf32>
    %144 = arith.addf %141, %143 : vector<2x128xf32>
    %cst_77 = arith.constant 7.216900e-02 : f32
    %145 = vector.broadcast %cst_77 : f32 to vector<2x128xf32>
    %146 = arith.mulf %145, %131 : vector<2x128xf32>
    %147 = arith.addf %144, %146 : vector<2x128xf32>
    %cst_78 = arith.constant 0.0177566744 : f32
    %148 = vector.broadcast %cst_78 : f32 to vector<2x128xf32>
    %149 = arith.mulf %148, %109 : vector<2x128xf32>
    %cst_79 = arith.constant 0.109468877 : f32
    %150 = vector.broadcast %cst_79 : f32 to vector<2x128xf32>
    %151 = arith.mulf %150, %120 : vector<2x128xf32>
    %152 = arith.addf %149, %151 : vector<2x128xf32>
    %cst_80 = arith.constant 0.872704625 : f32
    %153 = vector.broadcast %cst_80 : f32 to vector<2x128xf32>
    %154 = arith.mulf %153, %131 : vector<2x128xf32>
    %155 = arith.addf %152, %154 : vector<2x128xf32>
    %cst_81 = arith.constant 8.856000e-03 : f32
    %156 = vector.broadcast %cst_81 : f32 to vector<2x128xf32>
    %157 = arith.cmpf ogt, %139, %156 : vector<2x128xf32>
    %cst_82 = arith.constant 0.333333343 : f32
    %158 = vector.broadcast %cst_82 : f32 to vector<2x128xf32>
    %159 = math.powf %139, %158 : vector<2x128xf32>
    %cst_83 = arith.constant 7.787000e+00 : f32
    %160 = vector.broadcast %cst_83 : f32 to vector<2x128xf32>
    %161 = arith.mulf %160, %139 : vector<2x128xf32>
    %cst_84 = arith.constant 0.137931034 : f32
    %162 = vector.broadcast %cst_84 : f32 to vector<2x128xf32>
    %163 = arith.addf %161, %162 : vector<2x128xf32>
    %164 = arith.select %157, %159, %163 : vector<2x128xi1>, vector<2x128xf32>
    %cst_85 = arith.constant 8.856000e-03 : f32
    %165 = vector.broadcast %cst_85 : f32 to vector<2x128xf32>
    %166 = arith.cmpf ogt, %147, %165 : vector<2x128xf32>
    %cst_86 = arith.constant 0.333333343 : f32
    %167 = vector.broadcast %cst_86 : f32 to vector<2x128xf32>
    %168 = math.powf %147, %167 : vector<2x128xf32>
    %cst_87 = arith.constant 7.787000e+00 : f32
    %169 = vector.broadcast %cst_87 : f32 to vector<2x128xf32>
    %170 = arith.mulf %169, %147 : vector<2x128xf32>
    %cst_88 = arith.constant 0.137931034 : f32
    %171 = vector.broadcast %cst_88 : f32 to vector<2x128xf32>
    %172 = arith.addf %170, %171 : vector<2x128xf32>
    %173 = arith.select %166, %168, %172 : vector<2x128xi1>, vector<2x128xf32>
    %cst_89 = arith.constant 8.856000e-03 : f32
    %174 = vector.broadcast %cst_89 : f32 to vector<2x128xf32>
    %175 = arith.cmpf ogt, %155, %174 : vector<2x128xf32>
    %cst_90 = arith.constant 0.333333343 : f32
    %176 = vector.broadcast %cst_90 : f32 to vector<2x128xf32>
    %177 = math.powf %155, %176 : vector<2x128xf32>
    %cst_91 = arith.constant 7.787000e+00 : f32
    %178 = vector.broadcast %cst_91 : f32 to vector<2x128xf32>
    %179 = arith.mulf %178, %155 : vector<2x128xf32>
    %cst_92 = arith.constant 0.137931034 : f32
    %180 = vector.broadcast %cst_92 : f32 to vector<2x128xf32>
    %181 = arith.addf %179, %180 : vector<2x128xf32>
    %182 = arith.select %175, %177, %181 : vector<2x128xi1>, vector<2x128xf32>
    %183 = arith.subf %74, %164 : vector<2x128xf32>
    %184 = arith.subf %83, %173 : vector<2x128xf32>
    %185 = arith.subf %92, %182 : vector<2x128xf32>
    %cst_93 = arith.constant 1.345600e+04 : f32
    %186 = vector.broadcast %cst_93 : f32 to vector<2x128xf32>
    %187 = arith.mulf %186, %184 : vector<2x128xf32>
    %188 = arith.mulf %187, %184 : vector<2x128xf32>
    %189 = arith.subf %183, %184 : vector<2x128xf32>
    %cst_94 = arith.constant 2.500000e+05 : f32
    %190 = vector.broadcast %cst_94 : f32 to vector<2x128xf32>
    %191 = arith.mulf %190, %189 : vector<2x128xf32>
    %192 = arith.subf %183, %184 : vector<2x128xf32>
    %193 = arith.mulf %191, %192 : vector<2x128xf32>
    %194 = arith.addf %188, %193 : vector<2x128xf32>
    %195 = arith.subf %184, %185 : vector<2x128xf32>
    %cst_95 = arith.constant 4.000000e+04 : f32
    %196 = vector.broadcast %cst_95 : f32 to vector<2x128xf32>
    %197 = arith.mulf %196, %195 : vector<2x128xf32>
    %198 = arith.subf %184, %185 : vector<2x128xf32>
    %199 = arith.mulf %197, %198 : vector<2x128xf32>
    %200 = arith.addf %194, %199 : vector<2x128xf32>
    %c0_96 = arith.constant 0 : index
    %c0_97 = arith.constant 0 : index
    %c0_98 = arith.constant 0 : index
    %c0_99 = arith.constant 0 : index
    %201 = vector.load %arg5[%c0_96, %c0_97, %c0_98, %c0_99] : memref<1x1x1x128xf32, #tpu.memory_space<vmem>>, vector<1x1x1x128xf32>
    %cst_100 = arith.constant dense<0.000000e+00> : vector<128xf32>
    %202 = vector.multi_reduction <add>, %200, %cst_100 [0] : vector<2x128xf32> to vector<128xf32>
    %203 = vector.shape_cast %202 : vector<128xf32> to vector<1x128xf32>
    %204 = vector.shape_cast %203 : vector<1x128xf32> to vector<1x1x1x128xf32>
    %205 = arith.addf %201, %204 : vector<1x1x1x128xf32>
    %c0_101 = arith.constant 0 : index
    %c0_102 = arith.constant 0 : index
    %c0_103 = arith.constant 0 : index
    %c0_104 = arith.constant 0 : index
    %206 = vector.load %arg5[%c0_101, %c0_102, %c0_103, %c0_104] : memref<1x1x1x128xf32, #tpu.memory_space<vmem>>, vector<1x1x1x128xf32>
    tpu.vector_store %arg5[%c0_101, %c0_102, %c0_103, %c0_104], %205 {strides = array<i32>} : memref<1x1x1x128xf32, #tpu.memory_space<vmem>>, vector<1x1x1x128xf32>,
    return
  }
  func.func @transform_0(%arg0: i32, %arg1: i32, %arg2: i32) -> (i32, i32, i32, i32) {
    %c1_i32 = arith.constant 1 : i32
    %0 = arith.muli %arg1, %c1_i32 : i32
    %1 = arith.addi %0, %arg2 : i32
    %c0_i32 = arith.constant 0 : i32
    %2 = arith.minsi %1, %c0_i32 : i32
    %c0_i32_0 = arith.constant 0 : i32
    %c0_i32_1 = arith.constant 0 : i32
    %c0_i32_2 = arith.constant 0 : i32
    return %arg0, %c0_i32_0, %2, %c0_i32_1 : i32, i32, i32, i32
  }
  func.func @transform_1(%arg0: i32, %arg1: i32, %arg2: i32) -> (i32, i32, i32, i32) {
    %c1_i32 = arith.constant 1 : i32
    %0 = arith.muli %arg1, %c1_i32 : i32
    %1 = arith.addi %0, %arg2 : i32
    %c0_i32 = arith.constant 0 : i32
    %2 = arith.minsi %1, %c0_i32 : i32
    %c0_i32_0 = arith.constant 0 : i32
    %c0_i32_1 = arith.constant 0 : i32
    %c0_i32_2 = arith.constant 0 : i32
    return %arg0, %c0_i32_0, %2, %c0_i32_1 : i32, i32, i32, i32
  }
  func.func @transform_2(%arg0: i32, %arg1: i32, %arg2: i32) -> (i32, i32, i32, i32) {
    %c0_i32 = arith.constant 0 : i32
    %c0_i32_0 = arith.constant 0 : i32
    %c0_i32_1 = arith.constant 0 : i32
    return %arg0, %arg1, %c0_i32, %c0_i32_0 : i32, i32, i32, i32
  }
}

</mosaic_0001>

<bundles_post_ra>
// kernel: color_consistency_loss.1
= control target key start
LH: loop header
LB: loop body
LE: loop exit
PB: predicated region body
PF: predicated region fallthrough
CT: control target
= control target key end

     0   :  { %s871_s9 = smov 0   ;;  %s873_s10 = smov 0   ;;  %s1198_s0 = inlined_call_operand.vmem [shape: f32[2,3,2,128], index: 0, kind: input, shape index: {}]   ;;  %s1199_s1 = inlined_call_operand.vmem [shape: f32[2,3,2,128], index: 1, kind: input, shape index: {}]   ;;  %s1200_s2 = inlined_call_operand.vmem [shape: f32[2,1,1,128], index: 2, kind: output, shape index: {}]  }
   0x1   :  { %s875_s11 = smov 0  }
   0x2 LB: > { %s31_s12 = sadd.s32 1, %s849_s10  ;;  %p484_p0 = scmp.ge.s32.totalorder %s853_s11, 1  ;;  %s853_s11 = sphi %s875_s11, %s12_s11   ;;  %s849_s10 = sphi %s873_s10, %s1216_s10   ;;  %s845_s9 = sphi %s871_s9, %s1215_s9  }
   0x3   : > { %p33_p1 = scmp.ge.s32.totalorder %s31_s12, 2  ;;  %p177_p2 = scmp.lt.s32.totalorder %s853_s11, 3 }
   0x5   : > { %s1218_s12 = smov (%p33_p1, %s31_s12), 0  ;;  %p178_p3 = pnand %p484_p0, %p177_p2 }
   0x6   : > { %p220_p4 = scmp.lt.s32.totalorder (!%p178_p3), %s845_s9, 1 }
   0x7   : > { %181 = sbr.rel (%p178_p3) target bundleno = 152 (0x98), region = 28 }
   0xc   : > { %s1220_s9 = smov (!%p220_p4, %s845_s9), 1  ;;  %v855_v0 = vmov 0.0  }
   0xd   : > { %s493_s13 = smul.u32 6, %s1220_s9  ;;  %s892_s16 = scalar_lea.vmem %s1200_s2, %s1220_s9 }
   0xe   : > { %255 = vst [vmem:[%s892_s16] sm:$0x1] %v855_v0 }
   0xf   : > { %s227_s19 = scalar_lea.vmem %s1198_s0, %s493_s13  ;;  %s241_s22 = scalar_lea.vmem %s1199_s1, %s493_s13 }
  0x10   : > { %v898_v1 = vld [vmem:[%s227_s19] sm:$0x3]  ;;  %v900_v2 = vld [vmem:[%s227_s19 + $0x2] sm:$0x3]  ;;  %v902_v3 = vld [vmem:[%s227_s19 + $0x4] sm:$0x3] }
  0x11   : > { %v262_v4 = vadd.f32 0.055, %v898_v1  ;;  %v270_v5 = vadd.f32 0.055, %v900_v2  ;;  %v276_v8 = vadd.f32 0.055, %v902_v3 }
  0x12   : > { %v916_v11 = vld [vmem:[%s241_s22] sm:$0x3]  ;;  %v920_v13 = vld [vmem:[%s241_s22 + $0x2] sm:$0x3]  ;;  %v922_v14 = vld [vmem:[%s241_s22 + $0x4] sm:$0x3] }
  0x13   : > { %v909_v6 = vmul.f32 0.94786733, %v262_v4  ;;  %v911_v7 = vmul.f32 0.94786733, %v270_v5  ;;  %v918_v12 = vmul.f32 0.94786733, %v276_v8 }
  0x14   : > { %v317_v15 = vadd.f32 0.055, %v916_v11  ;;  %v323_v18 = vadd.f32 0.055, %v920_v13  ;;  %v329_v19 = vadd.f32 0.055, %v922_v14 }
  0x15   : > { %v498_v9 = vand.u32 2147483647, %v909_v6  ;;  %v524_v10 = vand.u32 2147483647, %v911_v7  ;;  %v550_v16 = vand.u32 2147483647, %v918_v12  ;;  %vm515_vm9 = vcmp.ne.f32.partialorder %v909_v6, %v909_v6 }
  0x16   : > { %v926_v17 = vmul.f32 0.94786733, %v317_v15  ;;  %v933_v21 = vmul.f32 0.94786733, %v323_v18  ;;  %v935_v22 = vmul.f32 0.94786733, %v329_v19  ;;  %vm541_vm12 = vcmp.ne.f32.partialorder %v911_v7, %v911_v7 }
  0x17   : > { %783 = vlog2.f32 %v498_v9  ;;  %vm261_vm0 = vcmp.gt.f32.partialorder %v898_v1, 0.04045  ;;  %vm502_vm1 = vcmp.lt.f32.partialorder %v909_v6, 0  ;;  %v267_v37 = vmul.f32 0.07739938, %v898_v1 }
  0x18   : > { %785 = vlog2.f32 %v524_v10  ;;  %v630_v20 = vand.u32 2147483647, %v926_v17  ;;  %v656_v23 = vand.u32 2147483647, %v933_v21  ;;  %v682_v24 = vand.u32 2147483647, %v935_v22 }
  0x19   : > { %787 = vlog2.f32 %v550_v16  ;;  %vm269_vm2 = vcmp.gt.f32.partialorder %v900_v2, 0.04045  ;;  %vm503_vm3 = vcmp.eq.f32.partialorder %v909_v6, 0  ;;  %vm528_vm4 = vcmp.lt.f32.partialorder %v911_v7, 0 }
  0x1a   : > { %789 = vlog2.f32 %v630_v20  ;;  %v273_v38 = vmul.f32 0.07739938, %v900_v2  ;;  %v279_v39 = vmul.f32 0.07739938, %v902_v3  ;;  %vm504_vm5 = vcmp.eq.f32.partialorder %v909_v6, 1065353216 }
  0x1b   : > { %791 = vlog2.f32 %v656_v23  ;;  %vm954_vm6 = vcmp.eq.f32.partialorder %v498_v9, 2139095040  ;;  %vm529_vm7 = vcmp.eq.f32.partialorder %v911_v7, 0  ;;  %vm275_vm8 = vcmp.gt.f32.partialorder %v902_v3, 0.04045 }
  0x1c   : > { %793 = vlog2.f32 %v682_v24  ;;  %vm962_vm10 = vcmp.eq.f32.partialorder %v524_v10, 2139095040  ;;  %vm530_vm11 = vcmp.eq.f32.partialorder %v911_v7, 1065353216  ;;  %vm554_vm13 = vcmp.lt.f32.partialorder %v918_v12, 0 }
  0x1d   : > { %vm555_vm14 = vcmp.eq.f32.partialorder %v918_v12, 0  ;;  %vm556_vm15 = vcmp.eq.f32.partialorder %v918_v12, 1065353216  ;;  %v332_v41 = vmul.f32 0.07739938, %v922_v14 }
  0x24   : > { %v784_v25 = vpop.eup %783 }
  0x25   : > { %v786_v26 = vpop.eup %785  ;;  %v500_v27 = vmul.f32 2.4, %v784_v25 }
  0x26   : > { %v526_v28 = vmul.f32 2.4, %v786_v26  ;;  %v788_v29 = vpop.eup %787 }
  0x27   : > { %795 = vpow2.f32 %v500_v27  ;;  %v552_v30 = vmul.f32 2.4, %v788_v29  ;;  %v790_v31 = vpop.eup %789 }
  0x28   : > { %797 = vpow2.f32 %v526_v28  ;;  %v632_v32 = vmul.f32 2.4, %v790_v31  ;;  %v792_v33 = vpop.eup %791 }
  0x29   : > { %799 = vpow2.f32 %v552_v30  ;;  %v794_v34 = vpop.eup %793  ;;  %v658_v35 = vmul.f32 2.4, %v792_v33  ;;  %v320_v33 = vmul.f32 0.07739938, %v916_v11 }
  0x2a   : > { %801 = vpow2.f32 %v632_v32  ;;  %v684_v36 = vmul.f32 2.4, %v794_v34 }
  0x2b   : > { %803 = vpow2.f32 %v658_v35 }
  0x2c   : > { %805 = vpow2.f32 %v684_v36 }
  0x34   : > { %v796_v40 = vpop.eup %795 }
  0x35   : > { %v798_v42 = vpop.eup %797  ;;  %v508_v43 = vsel %vm502_vm1, 2143289344, %v796_v40  ;;  %vm567_vm1 = vcmp.ne.f32.partialorder %v918_v12, %v918_v12 }
  0x36   : > { %v509_v45 = vsel %vm503_vm3, 0, %v508_v43  ;;  %v534_v46 = vsel %vm528_vm4, 2143289344, %v798_v42  ;;  %v800_v51 = vpop.eup %799  ;;  %vm559_vm3 = vcmp.eq.f32.partialorder %v550_v16, 2139095040  ;;  %vm634_vm4 = vcmp.lt.f32.partialorder %v926_v17, 0 }
  0x37   : > { %v514_v47 = vsel %vm954_vm6, 2139095040, %v509_v45  ;;  %v535_v48 = vsel %vm529_vm7, 0, %v534_v46  ;;  %v560_v56 = vsel %vm554_vm13, 2143289344, %v800_v51  ;;  %vm635_vm6 = vcmp.eq.f32.partialorder %v926_v17, 0  ;;  %v802_v61 = vpop.eup %801 }
  0x38   : > { %v518_v49 = vsel %vm515_vm9, 2143289344, %v514_v47  ;;  %v540_v50 = vsel %vm962_vm10, 2139095040, %v535_v48  ;;  %v561_v58 = vsel %vm555_vm14, 0, %v560_v56  ;;  %v640_v2 = vsel %vm634_vm4, 2143289344, %v802_v61  ;;  %v804_v19 = vpop.eup %803 }
  0x39   : > { %v519_v52 = vsel %vm504_vm5, 1065353216, %v518_v49  ;;  %v544_v53 = vsel %vm541_vm12, 2143289344, %v540_v50  ;;  %v566_v62 = vsel %vm559_vm3, 2139095040, %v561_v58  ;;  %v641_v9 = vsel %vm635_vm6, 0, %v640_v2  ;;  %v806_v12 = vpop.eup %805 }
  0x3a   : > { %v268_v54 = vsel %vm261_vm0, %v519_v52, %v267_v37  ;;  %v545_v55 = vsel %vm530_vm11, 1065353216, %v544_v53  ;;  %v570_v1 = vsel %vm567_vm1, 2143289344, %v566_v62  ;;  %vm997_vm0 = vcmp.eq.f32.partialorder %v630_v20, 2139095040 }
  0x3b   : > { %v274_v57 = vsel %vm269_vm2, %v545_v55, %v273_v38  ;;  %v281_v59 = vmul.f32 0.43394637, %v268_v54  ;;  %v286_v60 = vmul.f32 0.212671, %v268_v54  ;;  %v291_v4 = vmul.f32 0.017756674, %v268_v54 }
  0x3c   : > { %v282_v63 = vmul.f32 0.37621388, %v274_v57  ;;  %v287_v0 = vmul.f32 0.71516, %v274_v57  ;;  %v571_v6 = vsel %vm556_vm15, 1065353216, %v570_v1  ;;  %v646_v20 = vsel %vm997_vm0, 2139095040, %v641_v9 }
  0x3d   : > { %v292_v8 = vmul.f32 0.10946888, %v274_v57  ;;  %v280_v10 = vsel %vm275_vm8, %v571_v6, %v279_v39  ;;  %vm647_vm2 = vcmp.ne.f32.partialorder %v926_v17, %v926_v17  ;;  %vm660_vm5 = vcmp.lt.f32.partialorder %v933_v21, 0 }
  0x3e   : > { %v283_v7 = vadd.f32 %v282_v63, %v281_v59  ;;  %v288_v15 = vadd.f32 %v287_v0, %v286_v60  ;;  %v284_v16 = vmul.f32 0.18982503, %v280_v10  ;;  %v289_v18 = vmul.f32 0.072169, %v280_v10 }
  0x3f   : > { %v293_v26 = vadd.f32 %v292_v8, %v291_v4  ;;  %v294_v27 = vmul.f32 0.8727046, %v280_v10  ;;  %vm686_vm7 = vcmp.lt.f32.partialorder %v935_v22, 0  ;;  %vm636_vm8 = vcmp.eq.f32.partialorder %v926_v17, 1065353216 }
  0x40   : > { %v1014_v25 = vadd.f32 %v284_v16, %v283_v7  ;;  %v1017_v3 = vadd.f32 %v289_v18, %v288_v15  ;;  %v650_v29 = vsel %vm647_vm2, 2143289344, %v646_v20  ;;  %vm661_vm9 = vcmp.eq.f32.partialorder %v933_v21, 0 }
  0x41   : > { %v666_v30 = vsel %vm660_vm5, 2143289344, %v804_v19  ;;  %vm687_vm10 = vcmp.eq.f32.partialorder %v935_v22, 0  ;;  %v692_v31 = vsel %vm686_vm7, 2143289344, %v806_v12  ;;  %v1025_v32 = vadd.f32 %v294_v27, %v293_v26 }
  0x42   : > { %v1021_v28 = vand.u32 2147483647, %v1014_v25  ;;  %vm316_vm11 = vcmp.gt.f32.partialorder %v916_v11, 0.04045  ;;  %v1031_v17 = vand.u32 2147483647, %v1017_v3  ;;  %vm673_vm13 = vcmp.ne.f32.partialorder %v933_v21, %v933_v21 }
  0x43   : > { %v651_v34 = vsel %vm636_vm8, 1065353216, %v650_v29  ;;  %vm665_vm12 = vcmp.eq.f32.partialorder %v656_v23, 2139095040  ;;  %v667_v35 = vsel %vm661_vm9, 0, %v666_v30  ;;  %vm1039_vm14 = vcmp.eq.f32.partialorder %v682_v24, 2139095040 }
  0x44   : > { %807 = vlog2.f32 %v1021_v28  ;;  %v693_v37 = vsel %vm687_vm10, 0, %v692_v31  ;;  %vm322_vm15 = vcmp.gt.f32.partialorder %v920_v13, 0.04045  ;;  %vm662_vm1 = vcmp.eq.f32.partialorder %v933_v21, 1065353216 }
  0x45   : > { %809 = vlog2.f32 %v1031_v17  ;;  %v326_v11 = vmul.f32 0.07739938, %v920_v13  ;;  %v1048_v23 = vand.u32 2147483647, %v1025_v32  ;;  %v321_v38 = vsel %vm316_vm11, %v651_v34, %v320_v33 }
  0x46   : > { %v672_v39 = vsel %vm665_vm12, 2139095040, %v667_v35  ;;  %vm699_vm3 = vcmp.ne.f32.partialorder %v935_v22, %v935_v22  ;;  %vm688_vm4 = vcmp.eq.f32.partialorder %v935_v22, 1065353216  ;;  %v698_v40 = vsel %vm1039_vm14, 2139095040, %v693_v37 }
  0x47   : > { %v676_v24 = vsel %vm673_vm13, 2143289344, %v672_v39  ;;  %811 = vlog2.f32 %v1048_v23  ;;  %vm328_vm6 = vcmp.gt.f32.partialorder %v922_v14, 0.04045  ;;  %v702_v42 = vsel %vm699_vm3, 2143289344, %v698_v40 }
  0x48   : > { %v677_v21 = vsel %vm662_vm1, 1065353216, %v676_v24  ;;  %v334_v43 = vmul.f32 0.43394637, %v321_v38  ;;  %v339_v44 = vmul.f32 0.212671, %v321_v38  ;;  %v703_v46 = vsel %vm688_vm4, 1065353216, %v702_v42 }
  0x49   : > { %v327_v45 = vsel %vm322_vm15, %v677_v21, %v326_v11  ;;  %v333_v47 = vsel %vm328_vm6, %v703_v46, %v332_v41  ;;  %v344_v50 = vmul.f32 0.017756674, %v321_v38  ;;  %v578_v2 = vand.u32 2147483648, %v1014_v25 }
  0x4a   : > { %v335_v48 = vmul.f32 0.37621388, %v327_v45  ;;  %v340_v22 = vmul.f32 0.71516, %v327_v45  ;;  %v337_v49 = vmul.f32 0.18982503, %v333_v47  ;;  %vm582_vm0 = vweird.f32 %v1021_v28 }
  0x4b   : > { %v345_v51 = vmul.f32 0.10946888, %v327_v45  ;;  %v342_v54 = vmul.f32 0.072169, %v333_v47  ;;  %v347_v57 = vmul.f32 0.8727046, %v333_v47  ;;  %vm600_vm7 = vweird.f32 %v1031_v17 }
  0x4c   : > { %v336_v52 = vadd.f32 %v335_v48, %v334_v43  ;;  %v341_v53 = vadd.f32 %v340_v22, %v339_v44  ;;  %v596_v9 = vand.u32 2147483648, %v1017_v3  ;;  %v614_v19 = vand.u32 2147483648, %v1025_v32 }
  0x4d   : > { %v346_v14 = vadd.f32 %v345_v51, %v344_v50  ;;  %v298_v12 = vmul.f32 7.787, %v1014_v25  ;;  %vm572_vm2 = vcmp.eq.f32.partialorder %v1014_v25, 0.0  ;;  %vm573_vm5 = vcmp.lt.f32.partialorder %v1014_v25, 0.0 }
  0x4e   : > { %v1060_v56 = vadd.f32 %v337_v49, %v336_v52  ;;  %v1062_v59 = vadd.f32 %v342_v54, %v341_v53  ;;  %vm584_vm8 = vcmp.eq.f32.partialorder %v1021_v28, 0.0  ;;  %vm590_vm9 = vcmp.eq.f32.partialorder %v1017_v3, 0.0 }
  0x4f   : > { %v1068_v62 = vadd.f32 %v347_v57, %v346_v14  ;;  %v303_v30 = vmul.f32 7.787, %v1017_v3  ;;  %vm575_vm10 = vcmp.eq.f32.partialorder %v1021_v28, inf  ;;  %v308_v33 = vmul.f32 7.787, %v1025_v32 }
  0x50   : > { %v1065_v13 = vand.u32 2147483647, %v1060_v56  ;;  %v1071_v0 = vand.u32 2147483647, %v1062_v59  ;;  %v299_v34 = vadd.f32 0.13793103, %v298_v12  ;;  %vm618_vm12 = vweird.f32 %v1048_v23 }
  0x51   : > { %v808_v55 = vpop.eup %807  ;;  %v1075_v4 = vand.u32 2147483647, %v1068_v62  ;;  %vm602_vm11 = vcmp.eq.f32.partialorder %v1031_v17, 0.0  ;;  %vm591_vm13 = vcmp.lt.f32.partialorder %v1017_v3, 0.0  ;;  %vm609_vm15 = vcmp.lt.f32.partialorder %v1025_v32, 0.0 }
  0x52   : > { %v579_v58 = vmul.f32 0.33333334, %v808_v55  ;;  %v810_v60 = vpop.eup %809  ;;  %813 = vlog2.f32 %v1065_v13  ;;  %vm593_vm3 = vcmp.eq.f32.partialorder %v1031_v17, inf  ;;  %v304_v37 = vadd.f32 0.13793103, %v303_v30 }
  0x53   : > { %v597_v61 = vmul.f32 0.33333334, %v810_v60  ;;  %vm620_vm4 = vcmp.eq.f32.partialorder %v1048_v23, 0.0  ;;  %v710_v11 = vand.u32 2147483648, %v1060_v56  ;;  %v1103_v24 = vadd.f32 0.13793103, %v308_v33 }
  0x54   : > { %v812_v63 = vpop.eup %811  ;;  %815 = vpow2.f32 %v579_v58  ;;  %v351_v40 = vmul.f32 7.787, %v1060_v56  ;;  %vm705_vm1 = vcmp.lt.f32.partialorder %v1060_v56, 0.0  ;;  %vm716_vm14 = vcmp.eq.f32.partialorder %v1065_v13, 0.0 }
  0x55   : > { %817 = vpow2.f32 %v597_v61  ;;  %v615_v1 = vmul.f32 0.33333334, %v812_v63  ;;  %v728_v42 = vand.u32 2147483648, %v1062_v59  ;;  %v356_v46 = vmul.f32 7.787, %v1062_v59 }
  0x56   : > { %819 = vlog2.f32 %v1071_v0  ;;  %v352_v48 = vadd.f32 0.13793103, %v351_v40  ;;  %vm722_vm6 = vcmp.eq.f32.partialorder %v1062_v59, 0.0  ;;  %v746_v53 = vand.u32 2147483648, %v1068_v62  ;;  %v377_v40 = vld [vmem:[%s892_s16] sm:$0x1] }
  0x57   : > { %821 = vpow2.f32 %v615_v1  ;;  %v357_v57 = vadd.f32 0.13793103, %v356_v46  ;;  %v361_v60 = vmul.f32 7.787, %v1068_v62 }
  0x58   : > { %823 = vlog2.f32 %v1075_v4 }
  0x5f   : > { %v814_v5 = vpop.eup %813 }
  0x60   : > { %v711_v6 = vmul.f32 0.33333334, %v814_v5 }
  0x61   : > { %v816_v7 = vpop.eup %815 }
  0x62   : > { %v818_v8 = vpop.eup %817  ;;  %825 = vpow2.f32 %v711_v6  ;;  %v581_v15 = vor.u32 %v816_v7, %v578_v2 }
  0x63   : > { %v820_v10 = vpop.eup %819  ;;  %v599_v26 = vor.u32 %v818_v8, %v596_v9 }
  0x64   : > { %v729_v16 = vmul.f32 0.33333334, %v820_v10  ;;  %v822_v18 = vpop.eup %821  ;;  %v583_v29 = vsel %vm582_vm0, %v1014_v25, %v581_v15  ;;  %vm306_vm0 = vcmp.gt.f32.partialorder %v1025_v32, 0.008856 }
  0x65   : > { %v824_v20 = vpop.eup %823  ;;  %v617_v31 = vor.u32 %v822_v18, %v614_v19  ;;  %v601_v35 = vsel %vm600_vm7, %v1017_v3, %v599_v26  ;;  %v586_v36 = vsel %vm584_vm8, %v578_v2, %v583_v29  ;;  %vm704_vm8 = vcmp.eq.f32.partialorder %v1060_v56, 0.0 }
  0x66   : > { %827 = vpow2.f32 %v729_v16  ;;  %v747_v27 = vmul.f32 0.33333334, %v824_v20  ;;  %v604_v38 = vsel %vm602_vm11, %v596_v9, %v601_v35  ;;  %v587_v41 = vsel %vm573_vm5, nan, %v586_v36 }
  0x67   : > { %v619_v39 = vsel %vm618_vm12, %v1025_v32, %v617_v31  ;;  %vm707_vm11 = vcmp.eq.f32.partialorder %v1065_v13, inf  ;;  %vm714_vm12 = vweird.f32 %v1065_v13  ;;  %v605_v43 = vsel %vm591_vm13, nan, %v604_v38 }
  0x68   : > { %829 = vpow2.f32 %v747_v27  ;;  %v622_v44 = vsel %vm620_vm4, %v614_v19, %v619_v39  ;;  %v588_v47 = vsel %vm572_vm2, 0.0, %v587_v41  ;;  %vm723_vm7 = vcmp.lt.f32.partialorder %v1062_v59, 0.0 }
  0x69   : > { %vm725_vm13 = vcmp.eq.f32.partialorder %v1071_v0, inf  ;;  %vm732_vm4 = vweird.f32 %v1071_v0  ;;  %vm734_vm5 = vcmp.eq.f32.partialorder %v1071_v0, 0.0  ;;  %v606_v50 = vsel %vm590_vm9, 0.0, %v605_v43 }
  0x6a   : > { %v623_v51 = vsel %vm609_vm15, nan, %v622_v44  ;;  %v589_v54 = vsel %vm575_vm10, inf, %v588_v47  ;;  %vm750_vm2 = vweird.f32 %v1075_v4  ;;  %vm752_vm9 = vcmp.eq.f32.partialorder %v1075_v4, 0.0 }
  0x6b   : > { %v607_v63 = vsel %vm593_vm3, inf, %v606_v50  ;;  %vm1209_vm10 = vcmp.eq.f32.partialorder %v1025_v32, 0.0  ;;  %vm1211_vm15 = vcmp.gt.f32.partialorder %v1060_v56, 0.008856  ;;  %vm741_vm3 = vcmp.lt.f32.partialorder %v1068_v62, 0.0 }
  0x6c   : > { %v624_v28 = vsel %vm1209_vm10, 0.0, %v623_v51  ;;  %v362_v16 = vadd.f32 0.13793103, %v361_v60 }
  0x6f   : > { %v826_v21 = vpop.eup %825 }
  0x70   : > { %v713_v45 = vor.u32 %v826_v21, %v710_v11 }
  0x72   : > { %v715_v22 = vsel %vm714_vm12, %v1060_v56, %v713_v45  ;;  %vm1213_vm12 = vcmp.eq.f32.partialorder %v1048_v23, inf }
  0x73   : > { %v828_v49 = vpop.eup %827  ;;  %v718_v52 = vsel %vm716_vm14, %v710_v11, %v715_v22  ;;  %vm1210_vm14 = vcmp.gt.f32.partialorder %v1014_v25, 0.008856  ;;  %v625_v56 = vsel %vm1213_vm12, inf, %v624_v28 }
  0x74   : > { %v719_v55 = vsel %vm705_vm1, nan, %v718_v52  ;;  %v731_v14 = vor.u32 %v828_v49, %v728_v42  ;;  %v300_v2 = vsel %vm1210_vm14, %v589_v54, %v299_v34  ;;  %vm740_vm1 = vcmp.eq.f32.partialorder %v1068_v62, 0.0 }
  0x75   : > { %v720_v58 = vsel %vm704_vm8, 0.0, %v719_v55  ;;  %v830_v61 = vpop.eup %829  ;;  %vm743_vm8 = vcmp.eq.f32.partialorder %v1075_v4, inf  ;;  %v310_v19 = vsel %vm306_vm0, %v625_v56, %v1103_v24 }
  0x76   : > { %v721_v1 = vsel %vm707_vm11, inf, %v720_v58  ;;  %v733_v5 = vsel %vm732_vm4, %v1062_v59, %v731_v14  ;;  %v749_v7 = vor.u32 %v830_v61, %v746_v53  ;;  %vm1212_vm11 = vcmp.gt.f32.partialorder %v1017_v3, 0.008856 }
  0x77   : > { %v353_v6 = vsel %vm1211_vm15, %v721_v1, %v352_v48  ;;  %v736_v17 = vsel %vm734_vm5, %v728_v42, %v733_v5  ;;  %v305_v25 = vsel %vm1212_vm11, %v607_v63, %v304_v37  ;;  %vm359_vm5 = vcmp.gt.f32.partialorder %v1068_v62, 0.008856 }
  0x78   : > { %v737_v8 = vsel %vm723_vm7, nan, %v736_v17  ;;  %v751_v9 = vsel %vm750_vm2, %v1068_v62, %v749_v7  ;;  %v364_v18 = vsub.f32 %v300_v2, %v353_v6  ;;  %vm1214_vm7 = vcmp.gt.f32.partialorder %v1062_v59, 0.008856 }
  0x79   : > { %v738_v13 = vsel %vm722_vm6, 0.0, %v737_v8  ;;  %v754_v15 = vsel %vm752_vm9, %v746_v53, %v751_v9  ;;  %vm378_vm6 = vcmask 1041408  }
  0x7a   : > { %v739_v10 = vsel %vm725_vm13, inf, %v738_v13  ;;  %v755_v23 = vsel %vm741_vm3, nan, %v754_v15 }
  0x7b   : > { %v358_v3 = vsel %vm1214_vm7, %v739_v10, %v357_v57  ;;  %v756_v20 = vsel %vm740_vm1, 0.0, %v755_v23 }
  0x7c   : > { %v365_v12 = vsub.f32 %v305_v25, %v358_v3  ;;  %v757_v26 = vsel %vm743_vm8, inf, %v756_v20 }
  0x7d   : > { %v363_v0 = vsel %vm359_vm5, %v757_v26, %v362_v16 }
  0x7e   : > { %v367_v27 = vmul.f32 13456.0, %v365_v12  ;;  %v369_v29 = vsub.f32 %v364_v18, %v365_v12  ;;  %v366_v4 = vsub.f32 %v310_v19, %v363_v0 }
  0x80   : > { %v368_v30 = vmul.f32 %v367_v27, %v365_v12  ;;  %v370_v31 = vmul.f32 250000.0, %v369_v29  ;;  %v373_v33 = vsub.f32 %v365_v12, %v366_v4 }
  0x82   : > { %v371_v59 = vmul.f32 %v370_v31, %v369_v29  ;;  %v374_v34 = vmul.f32 40000.0, %v373_v33 }
  0x84   : > { %v372_v62 = vadd.f32 %v371_v59, %v368_v30  ;;  %v375_v35 = vmul.f32 %v374_v34, %v373_v33 }
  0x86   : > { %v376_v36 = vadd.f32 %v375_v35, %v372_v62 }
  0x88   : > { %v379_v32 = vsel %vm378_vm6, %v376_v36, 0.0 }
  0x89   : > { %v380_v37 = vrot.slane %v379_v32, 4 }
  0x8b   : > { %v381_v11 = vadd.f32 %v380_v37, %v379_v32 }
  0x8d   : > { %v382_v38 = vrot.slane %v381_v11, 2 }
  0x8f   : > { %v383_v39 = vadd.f32 %v382_v38, %v381_v11 }
  0x91   : > { %v384_v24 = vrot.slane %v383_v39, 1 }
  0x93   : > { %v385_v41 = vadd.f32 %v384_v24, %v383_v39 }
  0x95   : > { %v386_v21 = vadd.f32 %v385_v41, %v377_v40 }
  0x97   : > { %387 = vst [vmem:[%s892_s16] sm:$0x1] %v386_v21 }
  0x98 PF: > { %s12_s11 = sadd.s32 1, %s853_s11   ;;  %s1215_s9 = smov %s849_s10 }
  0x99   : > { %p9_p5 = scmp.ge.s32.totalorder %s12_s11, 4   ;;  %s1216_s10 = smov %s1218_s12 }
  0x9b   :  { %11 = sbr.rel (!%p9_p5) target bundleno = 2 (0x2), region = 69 }

</bundles_post_ra>
